<compile_context>
chip_gen: v7x
topology: tpu7x:2x2x1
jax: 0.10.0
libtpu: 0.0.40
codegen_flags: <defaults>
</compile_context>

<pallas_src>
import jax
import jax.numpy as jnp
from jax.experimental import pallas as pl
from jax.experimental.pallas import tpu as pltpu


def _focus_kernel(x_ref, w_ref, b_ref, o_ref):
    # x_ref: (1, Cin, TM) bf16  -- space-to-depth activations, spatial in lanes
    # w_ref: (C2, Cin)    bf16  -- 1x1 conv weight with BN scale pre-folded
    # b_ref: (C2, 1)      f32   -- fused BatchNorm bias
    # o_ref: (1, C2, TM)  f32
    y = jnp.dot(w_ref[...], x_ref[0],
                preferred_element_type=jnp.float32)      # MXU, f32 accumulation
    y = y + b_ref[...]                                   # fused BN bias (VPU, f32)
    y = y * jax.nn.sigmoid(y)                            # SiLU          (EUP, f32)
    o_ref[0] = y.astype(o_ref.dtype)


def _pick_tile(M, block_m):
    """Largest multiple of 128 <= block_m that divides M; else pad M up."""
    cap = max(128, min(block_m, pl.cdiv(M, 128) * 128))
    cap -= cap % 128
    for cand in range(cap, 0, -128):
        if M % cand == 0:
            return cand, M
    return cap, pl.cdiv(M, cap) * cap


def focus_pallas(x, w, scale, bias, *, block_m=4096):
    """YOLOv5 Focus forward.

    x:     (N, C1, H, W) float32, NCHW (PyTorch layout). H, W must be even.
    w:     (C2, 4*C1)    1x1 conv weight (PyTorch (C2, 4*C1, 1, 1) squeezed).
    scale, bias: (C2,)   eval-mode BatchNorm folded into y * scale + bias.
    returns (N, C2, H//2, W//2) float32.
    """
    N, C1, H, W = x.shape
    C2, Cin = w.shape
    assert Cin == 4 * C1 and H % 2 == 0 and W % 2 == 0
    Ho, Wo = H // 2, W // 2
    M = Ho * Wo

    # --- space-to-depth, PyTorch Focus channel order: [ee, oe, eo, oo] over (h, w) parity
    x_sd = jnp.concatenate(
        [x[:, :, ::2, ::2], x[:, :, 1::2, ::2],
         x[:, :, ::2, 1::2], x[:, :, 1::2, 1::2]], axis=1)      # (N, Cin, Ho, Wo)
    x_sd = x_sd.reshape(N, Cin, M)

    # --- lane-dense spatial tiling: TM multiple of 128; prefer TM that divides M exactly
    tm, m_pad = _pick_tile(M, block_m)
    if m_pad != M:
        x_sd = jnp.pad(x_sd, ((0, 0), (0, 0), (0, m_pad - M)))

    x_bf = x_sd.astype(jnp.bfloat16)                             # bf16 MXU operands
    # Fold BN scale into the (tiny) conv weight once, in f32, then cast to bf16.
    w_bf = (w.astype(jnp.float32) * scale.astype(jnp.float32)[:, None]).astype(jnp.bfloat16)
    b2 = bias.astype(jnp.float32).reshape(C2, 1)

    out = pl.pallas_call(
        _focus_kernel,
        out_shape=jax.ShapeDtypeStruct((N, C2, m_pad), jnp.float32),
        grid_spec=pltpu.PrefetchScalarGridSpec(
            num_scalar_prefetch=0,
            grid=(N, m_pad // tm),
            in_specs=[
                pl.BlockSpec((1, Cin, tm), lambda n, m: (n, 0, m)),   # activations
                pl.BlockSpec((C2, Cin),    lambda n, m: (0, 0)),      # fused conv weight
                pl.BlockSpec((C2, 1),      lambda n, m: (0, 0)),      # BN bias
            ],
            out_specs=pl.BlockSpec((1, C2, tm), lambda n, m: (n, 0, m)),
        ),
        compiler_params=pltpu.CompilerParams(
            dimension_semantics=("parallel", "parallel")),
    )(x_bf, w_bf, b2)

    if m_pad != M:
        out = out[:, :, :M]
    return out.reshape(N, C2, Ho, Wo)


def _fuse_bn(gamma, beta, mean, var, eps=1e-5):
    scale = gamma / jnp.sqrt(var + eps)
    bias = beta - mean * scale
    return scale, bias


def _focus_reference(x, w, scale, bias):
    """Pure-JAX f32 reference (NCHW) for correctness checking."""
    x_sd = jnp.concatenate(
        [x[:, :, ::2, ::2], x[:, :, 1::2, ::2],
         x[:, :, ::2, 1::2], x[:, :, 1::2, 1::2]], axis=1)       # (N, 4*C1, Ho, Wo)
    y = jnp.einsum('nchw,oc->nohw', x_sd, w)                     # 1x1 conv, no bias
    y = y * scale[None, :, None, None] + bias[None, :, None, None]
    return y * jax.nn.sigmoid(y)                                 # SiLU


if __name__ == "__main__":
    # Focus(c1=4, c2=32, k=1, s=1, p=None, g=1, act=SiLU)
    N, C1, H, W = 2, 4, 16, 16
    C2 = 32
    Cin = 4 * C1

    key = jax.random.PRNGKey(0)
    keys = jax.random.split(key, 8)

    x = jax.random.normal(keys[0], (N, C1, H, W), jnp.float32)

    # conv.conv: Conv2d(4*C1, C2, k=1, bias=False); weight (C2, 4*C1, 1, 1) squeezed
    w = 0.1 * jax.random.normal(keys[1], (C2, Cin), jnp.float32)

    # conv.bn: BatchNorm2d(C2), eval mode
    gamma = 1.0 + 0.1 * jax.random.normal(keys[2], (C2,), jnp.float32)
    beta = 0.1 * jax.random.normal(keys[3], (C2,), jnp.float32)
    mean = 0.1 * jax.random.normal(keys[4], (C2,), jnp.float32)
    var = jnp.abs(jax.random.normal(keys[5], (C2,), jnp.float32)) + 0.5

    scale, bias = _fuse_bn(gamma, beta, mean, var)

    out = focus_pallas(x, w, scale, bias)
    out = jax.block_until_ready(out)

    ref = _focus_reference(x, w, scale, bias)
    assert out.shape == (N, C2, H // 2, W // 2)
    # bf16 matmul operands -> slightly loosened tolerance vs the f32 reference
    assert jnp.allclose(out, ref, atol=5e-2, rtol=5e-2), "mismatch vs JAX reference"

    print("KERNEL_OK")
</pallas_src>

<mosaic_0001>
module attributes {stable_mosaic.version = 11 : i64} {
  func.func @_focus_kernel(%arg0: i32, %arg1: i32, %arg2: memref<1x16x128xbf16, #tpu.memory_space<vmem>>, %arg3: memref<32x16xbf16, #tpu.memory_space<vmem>>, %arg4: memref<32x1xf32, #tpu.memory_space<vmem>>, %arg5: memref<1x32x128xf32, #tpu.memory_space<vmem>>) attributes {dimension_semantics = [#tpu.dimension_semantics<parallel>, #tpu.dimension_semantics<parallel>], iteration_bounds = array<i64: 2, 1>, scalar_prefetch = 0 : i64, scratch_operands = 0 : i64, tpu.core_type = #tpu.core_type<tc>, window_params = [{transform_indices = @transform_0, window_bounds = array<i64: 1, 16, 128>}, {pipeline_mode = #tpu.pipeline_mode<synchronous>, transform_indices = @transform_1, window_bounds = array<i64: 32, 16>}, {pipeline_mode = #tpu.pipeline_mode<synchronous>, transform_indices = @transform_2, window_bounds = array<i64: 32, 1>}, {transform_indices = @transform_3, window_bounds = array<i64: 1, 32, 128>}]} {
    %c0 = arith.constant 0 : index
    %c0_0 = arith.constant 0 : index
    %0 = vector.load %arg3[%c0, %c0_0] : memref<32x16xbf16, #tpu.memory_space<vmem>>, vector<32x16xbf16>
    %c0_1 = arith.constant 0 : index
    %c0_2 = arith.constant 0 : index
    %c0_3 = arith.constant 0 : index
    %1 = vector.load %arg2[%c0_1, %c0_2, %c0_3] : memref<1x16x128xbf16, #tpu.memory_space<vmem>>, vector<1x16x128xbf16>
    %2 = vector.shape_cast %1 : vector<1x16x128xbf16> to vector<16x128xbf16>
    %cst = arith.constant dense<0.000000e+00> : vector<32x128xf32>
    %3 = tpu.matmul %0, %2, %cst {dimension_numbers = #tpu.dot_dimension_numbers<[1], [0], [0], [1], [0, 0, 1, 1], [], []>} : vector<32x16xbf16>, vector<16x128xbf16>, vector<32x128xf32> -> vector<32x128xf32>
    %c0_4 = arith.constant 0 : index
    %c0_5 = arith.constant 0 : index
    %4 = vector.load %arg4[%c0_4, %c0_5] : memref<32x1xf32, #tpu.memory_space<vmem>>, vector<32x1xf32>
    %5 = vector.broadcast %4 : vector<32x1xf32> to vector<32x128xf32>
    %6 = arith.addf %3, %5 : vector<32x128xf32>
    %7 = arith.negf %6 : vector<32x128xf32>
    %8 = math.exp %7 : vector<32x128xf32>
    %cst_6 = arith.constant 1.000000e+00 : f32
    %9 = vector.broadcast %cst_6 : f32 to vector<32x128xf32>
    %10 = arith.addf %9, %8 : vector<32x128xf32>
    %11 = arith.divf %9, %10 : vector<32x128xf32>
    %12 = arith.mulf %6, %11 : vector<32x128xf32>
    %c0_7 = arith.constant 0 : index
    %c0_8 = arith.constant 0 : index
    %c0_9 = arith.constant 0 : index
    %13 = vector.load %arg5[%c0_7, %c0_8, %c0_9] : memref<1x32x128xf32, #tpu.memory_space<vmem>>, vector<1x32x128xf32>
    %14 = vector.shape_cast %13 : vector<1x32x128xf32> to vector<32x128xf32>
    %15 = vector.shape_cast %12 : vector<32x128xf32> to vector<1x32x128xf32>
    tpu.vector_store %arg5[%c0_7, %c0_8, %c0_9], %15 {strides = array<i32>} : memref<1x32x128xf32, #tpu.memory_space<vmem>>, vector<1x32x128xf32>,
    return
  }
  func.func @transform_0(%arg0: i32, %arg1: i32) -> (i32, i32, i32) {
    %c0_i32 = arith.constant 0 : i32
    %c0_i32_0 = arith.constant 0 : i32
    return %arg0, %c0_i32, %arg1 : i32, i32, i32
  }
  func.func @transform_1(%arg0: i32, %arg1: i32) -> (i32, i32) {
    %c0_i32 = arith.constant 0 : i32
    %c0_i32_0 = arith.constant 0 : i32
    %c0_i32_1 = arith.constant 0 : i32
    return %c0_i32, %c0_i32_0 : i32, i32
  }
  func.func @transform_2(%arg0: i32, %arg1: i32) -> (i32, i32) {
    %c0_i32 = arith.constant 0 : i32
    %c0_i32_0 = arith.constant 0 : i32
    %c0_i32_1 = arith.constant 0 : i32
    return %c0_i32, %c0_i32_0 : i32, i32
  }
  func.func @transform_3(%arg0: i32, %arg1: i32) -> (i32, i32, i32) {
    %c0_i32 = arith.constant 0 : i32
    %c0_i32_0 = arith.constant 0 : i32
    return %arg0, %c0_i32, %arg1 : i32, i32, i32
  }
}

</mosaic_0001>

<bundles_post_ra>
// kernel: tpu_custom_call.1
= control target key start
LH: loop header
LB: loop body
LE: loop exit
PB: predicated region body
PF: predicated region fallthrough
CT: control target
= control target key end

     0   :  { %8 = vsyncpa [#allocation3], 0  ;;  %s773_s0 = inlined_call_operand.vmem [shape: bf16[2,16,128], index: 0, kind: input, shape index: {}]   ;;  %s774_s1 = inlined_call_operand.vmem [shape: bf16[32,16], index: 1, kind: input, shape index: {}]   ;;  %s775_s2 = inlined_call_operand.vmem [shape: f32[32,1], index: 2, kind: input, shape index: {}]   ;;  %s776_s3 = inlined_call_operand.hbm [shape: f32[2,32,128], index: 3, kind: output, shape index: {}]  }
   0x1   :  { %10 = vsyncpa [#allocation3 + $0x1], 0  ;;  %s638_s12 = smov 0   ;;  %s640_s13 = smov 0  }
   0x2   :  { %s642_s14 = smov 0   ;;  %s644_s15 = smov 0  }
   0x3   :  { %s646_s16 = smov 0   ;;  %s648_s17 = smov 0  }
   0x4 LB: > { %s422_s18 = sadd.s32 4294967295, %s612_s17   ;;  %s423_s19 = sadd.s32 4294967294, %s612_s17   ;;  %s612_s17 = sphi %s648_s17, %s16_s17   ;;  %s608_s16 = sphi %s646_s16, %s783_s16   ;;  %s604_s15 = sphi %s644_s15, %s782_s15   ;;  %s600_s14 = sphi %s642_s14, %s781_s14   ;;  %s596_s13 = sphi %s640_s13, %s780_s13   ;;  %s592_s12 = sphi %s638_s12, %s779_s12  }
   0x5   : > { %s28_s20 = sadd.s32 1, %s608_s16  ;;  %s107_s21 = sadd.s32 1, %s600_s14 }
   0x6   : > { %p30_p0 = scmp.ge.s32.totalorder %s28_s20, 2  ;;  %p117_p1 = scmp.ne.s32.totalorder %s600_s14, %s596_s13 }
   0x7   : > { %p118_p2 = scmp.eq.s32.totalorder %s422_s18, 1  ;;  %p123_p3 = scmp.ne.s32.totalorder %s596_s13, %s592_s12 }
   0x8   : > { %s785_s20 = smov (%p30_p0, %s28_s20), 0  ;;  %p124_p5 = scmp.eq.s32.totalorder %s423_s19, 1 }
   0x9   : > { %p678_p4 = por %p118_p2, %p117_p1  ;;  %s102_s23 = ssub.s32 %s608_s16, %s785_s20 }
   0xa   : > { %p426_p6 = scmp.ge.s32.totalorder %s612_s17, 1  ;;  %p105_p7 = scmp.eq.s32.totalorder %s102_s23, 0 }
   0xb   : > { %p685_p8 = por %p124_p5, %p123_p3  ;;  %p159_p9 = scmp.lt.s32.totalorder %s612_s17, 3 }
   0xc   : > { %s691_s25 = scalar_select %p105_p7, %s600_s14, %s107_s21  }
   0xd   : > { %p160_p10 = pnand %p426_p6, %p159_p9 }
   0xe   : > { %p186_p11 = scmp.lt.s32.totalorder (!%p160_p10), %s604_s15, 1  ;;  %v516_v0 = vld [vmem:[%s774_s1] sm:$0xff] (!%p160_p10)   ;;  %vm241_vm0 = vcmask (!%p160_p10), 130048   ;;  %v203_v1 = vld [vmem:[%s775_s2 + $0x10] sm:$0xff] (!%p160_p10)  ;;  %v614_v3 = vmov (!%p160_p10), 0   ;;  %v204_v4 = vld [vmem:[%s775_s2 + $0x18] sm:$0xff] (!%p160_p10) }
   0xf   : > { %163 = sbr.rel (%p160_p10) target bundleno = 291 (0x123), region = 32  ;;  %451 = vmatprep.mubr.msk.bf16.mxu0 (!%p160_p10), %vm241_vm0, %v516_v0  ;;  %v201_v2 = vld [vmem:[%s775_s2] sm:$0xff] (!%p160_p10)  ;;  %514 = vset.pattern.permute.xlu1 (!%p160_p10), %v614_v3  ;;  %v202_v5 = vld [vmem:[%s775_s2 + $0x8] sm:$0xff] (!%p160_p10)  ;;  %s183_s26 = sand.u32 (!%p160_p10), 1, %s596_s13  }
  0x10   : > { %513 = vset.pattern.permute.xlu0 (!%p160_p10), %v614_v3  ;;  %217 = vperm.xlu1 (!%p160_p10), %514, %v203_v1   ;;  %v517_v7 = vld [vmem:[%s774_s1 + $0x8] sm:$0xff] (!%p160_p10)   ;;  %s427_s27 = sshll.u32 (!%p160_p10), %s183_s26, 5  ;;  %s445_s30 = sshll.u32 (!%p160_p10), %s604_s15, 9 }
  0x11   : > { %207 = vperm.xlu0 (!%p160_p10), %513, %v201_v2   ;;  %s615_s8 = smov (!%p160_p10), [#allocation2]  }
  0x14   : > { %222 = vperm.xlu1 (!%p160_p10), %514, %v204_v4  }
  0x15   : > { %212 = vperm.xlu0 (!%p160_p10), %513, %v202_v5  }
  0x16   : > { %s187_s28 = scalar_select %p186_p11, %s604_s15, 1 }
  0x17   : > { %s727_s15 = scalar_lea.sflag [#allocation3], %s183_s26 }
  0x18   : > { %s444_s6 = sshll.u32 %s187_s28, 3  ;;  %s185_s28 = scalar_lea.vmem [#allocation2], %s427_s27 }
  0x19   : > { %s193_s9 = scalar_lea.vmem %s773_s0, %s444_s6  ;;  %s344_s29 = sshll.u32 %s185_s28, 4  ;;  %s720_s29 = int_to_ptr.vmem [resolvable:$true] %s344_s29 }
  0x1a   : > { %v515_v6 = vld [vmem:[%s193_s9] sm:$0xff]   ;;  %s725_s6 = scalar_lea.hbm %s776_s3, %s445_s30  ;;  %s534_s7 = scalar_lea.vmem %s720_s29, 512 }
  0x1b   : > { %449 = vmatprep.subr.bf16.mxu0 %v515_v6  ;;  %p535_p12 = scmp.ne.s32.totalorder %s720_s29, %s534_s7  ;;  %s538_s9 = sshll.u32 %s615_s8, 4  ;;  %s539_s9 = int_to_ptr.vmem [resolvable:$false] %s538_s9 }
  0x1c   : > { %450 = vmatpush3.bf16.msra.mxu0 %v515_v6  ;;  %s540_s10 = scalar_lea.vmem %s539_s9, 1024  ;;  %p541_p1 = scmp.lt.s32.totalorder %s720_s29, %s539_s9 }
  0x1d   : > { %p536_p13 = pnand %p535_p12, %p678_p4  ;;  %p542_p2 = scmp.lt.s32.totalorder %s540_s10, %s534_s7 }
  0x1f   : > { %452 = vmatmul.mubr.msk.bf16.vlgmr.msra.gmra.mrb[0].mxu0 %vm241_vm0, %v517_v7  ;;  %p537_p0 = pneg %p536_p13  ;;  %p543_p3 = por %p542_p2, %p541_p1 }
  0x21   : > { %p544_p5 = pnand %p543_p3, %p537_p0 }
  0x8f   : > { %v218_v8 = vpop.permute.xlu1 %217 }
  0x90   : > { %v208_v9 = vpop.permute.xlu0 %207 }
  0x93   : > { %v223_v13 = vpop.permute.xlu1 %222 }
  0x94   : > { %v213_v16 = vpop.permute.xlu0 %212 }
  0xf2   : > { %v453_v10 = vpop.f32.mrb[0].mxu0 }
  0xf3   : > { %v291_v11 = vadd.f32 %v453_v10, %v218_v8  ;;  %v282_v12 = vpop.f32.mrb[1].mxu0 }
  0xf4   : > { %v283_v14 = vadd.f32 %v282_v12, %v208_v9  ;;  %v454_v15 = vpop.f32.mrb[2].mxu0 }
  0xf5   : > { %v437_v17 = vmul.f32 -1.442695, %v291_v11  ;;  %v294_v18 = vadd.f32 %v454_v15, %v223_v13  ;;  %v285_v19 = vpop.f32.mrb[3].mxu0 }
  0xf6   : > { %v435_v20 = vmul.f32 -1.442695, %v283_v14  ;;  %v286_v21 = vadd.f32 %v285_v19, %v213_v16 }
  0xf7   : > { %518 = vpow2.f32 %v437_v17  ;;  %v438_v22 = vmul.f32 -1.442695, %v294_v18 }
  0xf8   : > { %520 = vpow2.f32 %v435_v20  ;;  %v436_v23 = vmul.f32 -1.442695, %v286_v21 }
  0xf9   : > { %522 = vpow2.f32 %v438_v22 }
  0xfa   : > { %524 = vpow2.f32 %v436_v23 }
 0x101   : > { %v519_v24 = vpop.eup %518 }
 0x102   : > { %v521_v25 = vpop.eup %520  ;;  %v311_v26 = vadd.f32 1.0, %v519_v24 }
 0x103   : > { %v523_v27 = vpop.eup %522  ;;  %v309_v28 = vadd.f32 1.0, %v521_v25 }
 0x104   : > { %v525_v29 = vpop.eup %524  ;;  %526 = vrcp.f32 %v311_v26  ;;  %v312_v30 = vadd.f32 1.0, %v523_v27 }
 0x105   : > { %528 = vrcp.f32 %v309_v28  ;;  %v310_v31 = vadd.f32 1.0, %v525_v29 }
 0x106   : > { %530 = vrcp.f32 %v312_v30 }
 0x107   : > { %532 = vrcp.f32 %v310_v31 }
 0x10e   : > { %v527_v32 = vpop.eup %526 }
 0x10f   : > { %v529_v33 = vpop.eup %528  ;;  %v323_v34 = vmul.f32 %v527_v32, %v291_v11 }
 0x110   : > { %v531_v35 = vpop.eup %530  ;;  %v321_v36 = vmul.f32 %v529_v33, %v283_v14 }
 0x111   : > { %v533_v37 = vpop.eup %532  ;;  %327 = vst [vmem:[%s185_s28 + $0x10] sm:$0xff] %v323_v34  ;;  %v324_v38 = vmul.f32 %v531_v35, %v294_v18 }
 0x112   : > { %325 = vst [vmem:[%s185_s28] sm:$0xff] %v321_v36  ;;  %v322_v39 = vmul.f32 %v533_v37, %v286_v21 }
 0x113   : > { %328 = vst [vmem:[%s185_s28 + $0x18] sm:$0xff] %v324_v38 }
 0x114   : > { %326 = vst [vmem:[%s185_s28 + $0x8] sm:$0xff] %v322_v39 }
 0x115   : > { %547 = shalt.err (!%p544_p5)
}
 0x116   : > { %s548_s11 = scalar_lea.hbm %s725_s6, 512  ;;  %s552_s21 = scalar_lea.hbm %s776_s3, 1024 }
 0x117   : > { %p549_p6 = scmp.ne.s32.totalorder %s725_s6, %s548_s11  ;;  %p553_p10 = scmp.lt.u32.totalorder %s725_s6, %s776_s3 }
 0x118   : > { %p554_p11 = scmp.lt.u32.totalorder %s552_s21, %s548_s11  ;;  %p556_p13 = scmp.lt.u32.totalorder %s548_s11, %s725_s6 }
 0x119   : > { %p550_p7 = pnand %p549_p6, %p678_p4 }
 0x11a   : > { %p555_p12 = por %p554_p11, %p553_p10 }
 0x11b   : > { %p551_p9 = pneg %p550_p7 }
 0x11c   : > { %p557_p0 = por %p556_p13, %p555_p12 }
 0x11e   : > { %p558_p1 = pnand %p557_p0, %p551_p9 }
 0x120   : > { %561 = shalt.err (!%p558_p1)
}
 0x121   : > { %s616_s27 = smov 128   ;;  %s617_s28 = smov 8  }
 0x122   : > { %455 = dma.vmem_to_hbm [thread:$0]  (%p678_p4), %s720_s29, 512, %s725_s6, %s727_s15, %s616_s27, %s616_s27, %s617_s28  }
 0x123 PF: > { %p461_p2 = scmp.ge.s32.totalorder %s612_s17, 2  ;;  %s359_s30 = sand.u32 1, %s592_s12  }
 0x124   : > { %s360_s4 = scalar_lea.sflag [#allocation3], %s359_s30 }
 0x125   : > { %p458_p3 = pnand %p461_p2, %p685_p8 }
 0x127   : > { %587 = dma.done.wait (!%p458_p3), %s360_s4, 512  }
 0x128   : > { %589 = vsyncadd (!%p458_p3), %s360_s4, 4294966784  ;;  %s16_s17 = sadd.s32 1, %s612_s17   ;;  %s779_s12 = smov %s596_s13 }
 0x129   : > { %p13_p5 = scmp.ge.s32.totalorder %s16_s17, 4   ;;  %s780_s13 = smov %s600_s14 }
 0x12a   : > { %s781_s14 = smov %s691_s25  ;;  %s782_s15 = smov %s608_s16 }
 0x12b   : > { %s783_s16 = smov %s785_s20  ;;  %15 = sbr.rel (!%p13_p5) target bundleno = 4 (0x4), region = 67 }
 0x132   :  { %365 = vsyncpa [#allocation3], 1 }
 0x133   :  { %367 = vsyncpa [#allocation3 + $0x1], 1 }

</bundles_post_ra>
